<compile_context>
chip_gen: v7x
topology: tpu7x:2x2x1
jax: 0.10.0
libtpu: 0.0.40
codegen_flags: <defaults>
</compile_context>

<pallas_src>
import jax
import jax.numpy as jnp
from jax.experimental import pallas as pl
from jax.experimental.pallas import tpu as pltpu


# ---------------------------------------------------------------------------
# Kernel
# ---------------------------------------------------------------------------
def fae_kernel(x_ref,
               w1_ref, b1_ref,
               w2_ref, b2_ref,
               w3_ref, b3_ref,
               w4_ref, b4_ref,
               o_ref):
    """Fused FeatureAutoEncoder forward: 4 x (Linear + folded BN + ReLU).

    Matmul operands are cast to the weight dtype (f32 or bf16) and accumulate
    in f32 on the MXU; bias add + ReLU stay in f32 on the VPU; only the final
    store casts to the output dtype.  Intermediate activations are 128-lane
    dense (zero-padded weights), the final layer is unpadded.
    """
    def layer(h, w_ref, b_ref):
        z = jnp.dot(h.astype(w_ref.dtype), w_ref[...],
                    preferred_element_type=jnp.float32)
        return jnp.maximum(z + b_ref[...], 0.0)

    h = layer(x_ref[...], w1_ref, b1_ref)   # encoder L1 (Dropout = identity in eval)
    h = layer(h, w2_ref, b2_ref)            # encoder L2
    h = layer(h, w3_ref, b3_ref)            # decoder L1
    h = layer(h, w4_ref, b4_ref)            # decoder L2 (unpadded output cols)
    o_ref[...] = h.astype(o_ref.dtype)


# ---------------------------------------------------------------------------
# Parameter folding (BN -> Linear) and tiling helpers
# ---------------------------------------------------------------------------
def _round_up(x, m):
    return (x + m - 1) // m * m


def _fold_bn(w, b, gamma, beta, mean, var, *, eps=1e-5,
             pad_in_to=None, pad_out_to=None, w_dtype=jnp.float32):
    """Fold eval-mode BatchNorm1d into the preceding Linear.

    w: (out, in) PyTorch layout, b: (out,).
    Returns (w_f: (in[_pad], out[_pad]) in w_dtype, b_f: (1, out[_pad]) f32) s.t.
      relu(x @ w_f + b_f) == relu(BN(x @ w.T + b))   (up to w_dtype rounding).
    Padded output columns are exact zeros (bias padded to 0, relu(0) = 0) and
    padded input rows only ever multiply the previous layer's zero columns.
    """
    scale = gamma / jnp.sqrt(var + eps)                 # (out,)
    w_f = w.T * scale[None, :]                          # (in, out)
    b_f = (b - mean) * scale + beta                     # (out,)
    if pad_out_to is not None and pad_out_to > w_f.shape[1]:
        pad = pad_out_to - w_f.shape[1]
        w_f = jnp.pad(w_f, ((0, 0), (0, pad)))
        b_f = jnp.pad(b_f, ((0, pad),))
    if pad_in_to is not None and pad_in_to > w_f.shape[0]:
        w_f = jnp.pad(w_f, ((0, pad_in_to - w_f.shape[0]), (0, 0)))
    return w_f.astype(w_dtype), b_f[None, :].astype(jnp.float32)


def fold_params(raw_layers, *, io_dtype=jnp.float32, lane=128):
    """Fold BN into each Linear; lane-pad intermediate widths (not the output)."""
    folded = []
    prev_pad = None
    for li, layer in enumerate(raw_layers):
        is_last = li == len(raw_layers) - 1
        out_dim = layer[0].shape[0]
        pad_out = None if is_last else _round_up(out_dim, lane)
        folded.append(_fold_bn(*layer, pad_in_to=prev_pad, pad_out_to=pad_out,
                               w_dtype=io_dtype))
        prev_pad = pad_out
    return folded


def _vmem_capacity_bytes():
    """Generation-aware VMEM capacity; conservative (v7x) fallback."""
    try:
        return int(pltpu.get_tpu_info().vmem_capacity_bytes)
    except Exception:
        return 64 << 20


def _row_align(io_dtype):
    itm = jnp.dtype(io_dtype).itemsize
    return {1: 32, 2: 16}.get(itm, 8)    # packed sublanes: bf16 -> 16, int8 -> 32


def _pick_tile_n(n, input_dim, io_dtype):
    """Largest batch tile that fits the scoped VMEM budget, keeps >=~8 grid
    steps when possible (v7x 2-TC load balance) and caps per-step overhead."""
    itm = jnp.dtype(io_dtype).itemsize
    align = _row_align(io_dtype)
    budget = min(_vmem_capacity_bytes() * 3 // 4, 110 << 20)
    # per-row VMEM bytes: double-buffered x + out tiles (io dtype), three
    # 128-lane f32 intermediates, final-layer f32 accumulator.
    per_row = 4 * input_dim * itm + 3 * 128 * 4 + input_dim * 4
    tile = min(budget // per_row, 8192)          # >8192: overhead already <10%
    if n > 8 * align:
        tile = min(tile, pl.cdiv(n, 8))          # >=~8 grid steps
    if tile >= n:
        return n                                 # single full-array block (always legal)
    return max(align, _round_up(tile, align))


# ---------------------------------------------------------------------------
# Wrapper
# ---------------------------------------------------------------------------
def feature_autoencoder_forward(x, params, *, tile_n=None, io_dtype=jnp.float32):
    """x: (N, input_dim) -> (N, input_dim) in io_dtype.  params: fold_params()."""
    n, input_dim = x.shape
    itm = jnp.dtype(io_dtype).itemsize
    align = _row_align(io_dtype)

    if tile_n is None:
        tile_n = _pick_tile_n(n, input_dim, io_dtype)
    elif tile_n >= n:
        tile_n = n                                   # one full-array block
    else:
        tile_n = max(align, _round_up(tile_n, align))

    grid = (pl.cdiv(n, tile_n),)                     # ragged last block is fine
    x_p = x.astype(io_dtype)

    def resident(a):
        # Whole-array block, constant index_map -> DMA'd once, VMEM-resident.
        # TODO(synk): at real feature widths add pipeline_mode=pl.Buffered(1)
        # (or tile K over a grid axis) so invariant weights aren't double-buffered.
        return pl.BlockSpec(a.shape, lambda i: (0,) * a.ndim)

    in_specs = [pl.BlockSpec((tile_n, input_dim), lambda i: (i, 0))]
    args = [x_p]
    for w_f, b_f in params:
        in_specs += [resident(w_f), resident(b_f)]
        args += [w_f, b_f]
    # Unpadded, lane-dense-enough output: last dim equals the full array dim.
    out_specs = pl.BlockSpec((tile_n, input_dim), lambda i: (i, 0))

    # Explicit, generation-aware VMEM budget.
    param_bytes = sum(int(w.size) * w.dtype.itemsize +
                      int(b.size) * b.dtype.itemsize for w, b in params)
    lane_pad = max(int(w.shape[1]) for w, _ in params)       # 128 here
    work_bytes = (4 * tile_n * input_dim * itm               # x + out, double-buffered
                  + 2 * param_bytes                          # resident weights (2 bufs)
                  + 3 * tile_n * lane_pad * 4                # f32 intermediates
                  + tile_n * input_dim * 4)                  # last-layer f32 accum
    cap = min(_vmem_capacity_bytes() * 3 // 4, 110 << 20)    # ~48 MiB v7x, ~96+ MiB v5e/v6e
    vmem_limit = int(min(cap, max(work_bytes + work_bytes // 2 + (4 << 20),
                                  32 << 20)))

    flops = 2 * n * sum(int(w.shape[0]) * int(w.shape[1]) for w, _ in params)
    bytes_accessed = 2 * n * input_dim * itm + param_bytes

    return pl.pallas_call(
        fae_kernel,
        out_shape=jax.ShapeDtypeStruct((n, input_dim), io_dtype),
        grid=grid,
        in_specs=in_specs,
        out_specs=out_specs,
        compiler_params=pltpu.CompilerParams(
            dimension_semantics=("parallel",),   # batch tiles shard across TCs (v7x)
            vmem_limit_bytes=vmem_limit),
        cost_estimate=pl.CostEstimate(
            flops=int(flops), transcendentals=0,
            bytes_accessed=int(bytes_accessed)),
    )(*args)


# ---------------------------------------------------------------------------
# References + demo
# ---------------------------------------------------------------------------
def _init_layer(key, in_dim, out_dim):
    """Deterministic synthetic params for Linear(in,out) + BatchNorm1d(out)."""
    ks = jax.random.split(key, 6)
    bound = 1.0 / jnp.sqrt(in_dim)
    w = jax.random.uniform(ks[0], (out_dim, in_dim), jnp.float32, -bound, bound)
    b = jax.random.uniform(ks[1], (out_dim,), jnp.float32, -bound, bound)
    gamma = jax.random.uniform(ks[2], (out_dim,), jnp.float32, 0.5, 1.5)
    beta = jax.random.uniform(ks[3], (out_dim,), jnp.float32, -0.5, 0.5)
    running_mean = jax.random.uniform(ks[4], (out_dim,), jnp.float32, -0.5, 0.5)
    running_var = jax.random.uniform(ks[5], (out_dim,), jnp.float32, 0.5, 1.5)
    return (w, b, gamma, beta, running_mean, running_var)


def _reference_forward(x, raw_layers, eps=1e-5):
    """Pure-JAX eval-mode reference: (Linear -> BN(running stats) -> ReLU) x4."""
    h = x
    for (w, b, gamma, beta, mean, var) in raw_layers:
        z = h @ w.T + b
        z = gamma * (z - mean) / jnp.sqrt(var + eps) + beta
        h = jnp.maximum(z, 0.0)
    return h


def _reference_forward_folded(x, folded, io_dtype):
    """Mimics the kernel's dtype handling (io_dtype matmul inputs, f32 accum)."""
    input_dim = x.shape[1]
    h = x.astype(io_dtype).astype(jnp.float32)
    for w_f, b_f in folded:
        h = h.astype(io_dtype).astype(jnp.float32)
        z = h @ w_f.astype(jnp.float32) + b_f
        h = jnp.maximum(z, 0.0)
    return h.astype(io_dtype)[:, :input_dim]


if __name__ == "__main__":
    batch = 8
    input_dim, hidden_dim, output_dim = 32, 64, 16

    key = jax.random.PRNGKey(0)
    kx, k1, k2, k3, k4, kbig = jax.random.split(key, 6)

    x = jax.random.normal(kx, (batch, input_dim), jnp.float32)

    # encoder: Linear(in->hid)+BN(hid), Linear(hid->out)+BN(out)
    # decoder: Linear(out->hid)+BN(hid), Linear(hid->in)+BN(in)
    raw_layers = [
        _init_layer(k1, input_dim, hidden_dim),
        _init_layer(k2, hidden_dim, output_dim),
        _init_layer(k3, output_dim, hidden_dim),
        _init_layer(k4, hidden_dim, input_dim),
    ]
    ref = _reference_forward(x, raw_layers)

    # --- f32 I/O path: strict check of eval-mode semantics -------------------
    folded_f32 = fold_params(raw_layers, io_dtype=jnp.float32)
    out_f32 = feature_autoencoder_forward(x, folded_f32, io_dtype=jnp.float32)
    out_f32 = jax.block_until_ready(out_f32)
    assert out_f32.shape == (batch, input_dim)
    assert jnp.allclose(out_f32, ref, atol=1e-4, rtol=1e-4), "f32 mismatch vs ref"

    # --- bf16 I/O path (bandwidth config, valid on v5e/v6e/v7x) --------------
    folded_bf16 = fold_params(raw_layers, io_dtype=jnp.bfloat16)
    out_bf16 = feature_autoencoder_forward(x, folded_bf16, io_dtype=jnp.bfloat16)
    out_bf16 = jax.block_until_ready(out_bf16)
    ref_bf16 = _reference_forward_folded(x, folded_bf16, jnp.bfloat16)
    assert out_bf16.shape == (batch, input_dim)
    assert jnp.allclose(out_bf16.astype(jnp.float32),
                        ref_bf16.astype(jnp.float32),
                        atol=1e-2, rtol=1e-2), "bf16 mismatch vs folded ref"

    # --- larger, non-divisible batch: exercises ragged last block + auto tile
    n_big = 1000
    x_big = jax.random.normal(kbig, (n_big, input_dim), jnp.float32)
    ref_big = _reference_forward(x_big, raw_layers)

    out_big_auto = feature_autoencoder_forward(x_big, folded_f32,
                                               io_dtype=jnp.float32)
    out_big_auto = jax.block_until_ready(out_big_auto)
    assert out_big_auto.shape == (n_big, input_dim)
    assert jnp.allclose(out_big_auto, ref_big, atol=1e-4, rtol=1e-4), \
        "auto-tile grid mismatch vs ref"

    out_big_256 = feature_autoencoder_forward(x_big, folded_f32, tile_n=256,
                                              io_dtype=jnp.float32)
    out_big_256 = jax.block_until_ready(out_big_256)
    assert jnp.allclose(out_big_256, ref_big, atol=1e-4, rtol=1e-4), \
        "explicit-tile grid mismatch vs ref"

    print("KERNEL_OK")
</pallas_src>

<mosaic_0001>
module attributes {stable_mosaic.version = 11 : i64} {
  func.func @fae_kernel(%arg0: i32, %arg1: memref<8x32xf32, #tpu.memory_space<vmem>>, %arg2: memref<32x128xf32, #tpu.memory_space<vmem>>, %arg3: memref<1x128xf32, #tpu.memory_space<vmem>>, %arg4: memref<128x128xf32, #tpu.memory_space<vmem>>, %arg5: memref<1x128xf32, #tpu.memory_space<vmem>>, %arg6: memref<128x128xf32, #tpu.memory_space<vmem>>, %arg7: memref<1x128xf32, #tpu.memory_space<vmem>>, %arg8: memref<128x32xf32, #tpu.memory_space<vmem>>, %arg9: memref<1x32xf32, #tpu.memory_space<vmem>>, %arg10: memref<8x32xf32, #tpu.memory_space<vmem>>) attributes {dimension_semantics = [#tpu.dimension_semantics<parallel>], iteration_bounds = array<i64: 1>, scalar_prefetch = 0 : i64, scratch_operands = 0 : i64, tpu.core_type = #tpu.core_type<tc>, window_params = [{transform_indices = @transform_0, window_bounds = array<i64: 8, 32>}, {pipeline_mode = #tpu.pipeline_mode<synchronous>, transform_indices = @transform_1, window_bounds = array<i64: 32, 128>}, {pipeline_mode = #tpu.pipeline_mode<synchronous>, transform_indices = @transform_2, window_bounds = array<i64: 1, 128>}, {pipeline_mode = #tpu.pipeline_mode<synchronous>, transform_indices = @transform_3, window_bounds = array<i64: 128, 128>}, {pipeline_mode = #tpu.pipeline_mode<synchronous>, transform_indices = @transform_4, window_bounds = array<i64: 1, 128>}, {pipeline_mode = #tpu.pipeline_mode<synchronous>, transform_indices = @transform_5, window_bounds = array<i64: 128, 128>}, {pipeline_mode = #tpu.pipeline_mode<synchronous>, transform_indices = @transform_6, window_bounds = array<i64: 1, 128>}, {pipeline_mode = #tpu.pipeline_mode<synchronous>, transform_indices = @transform_7, window_bounds = array<i64: 128, 32>}, {pipeline_mode = #tpu.pipeline_mode<synchronous>, transform_indices = @transform_8, window_bounds = array<i64: 1, 32>}, {transform_indices = @transform_9, window_bounds = array<i64: 8, 32>}]} {
    %c0 = arith.constant 0 : index
    %c0_0 = arith.constant 0 : index
    %0 = vector.load %arg1[%c0, %c0_0] : memref<8x32xf32, #tpu.memory_space<vmem>>, vector<8x32xf32>
    %c0_1 = arith.constant 0 : index
    %c0_2 = arith.constant 0 : index
    %1 = vector.load %arg2[%c0_1, %c0_2] : memref<32x128xf32, #tpu.memory_space<vmem>>, vector<32x128xf32>
    %cst = arith.constant dense<0.000000e+00> : vector<8x128xf32>
    %2 = tpu.matmul %0, %1, %cst {dimension_numbers = #tpu.dot_dimension_numbers<[1], [0], [0], [1], [0, 0, 1, 1], [], []>} : vector<8x32xf32>, vector<32x128xf32>, vector<8x128xf32> -> vector<8x128xf32>
    %c0_3 = arith.constant 0 : index
    %c0_4 = arith.constant 0 : index
    %3 = vector.load %arg3[%c0_3, %c0_4] : memref<1x128xf32, #tpu.memory_space<vmem>>, vector<1x128xf32>
    %4 = vector.broadcast %3 : vector<1x128xf32> to vector<8x128xf32>
    %5 = arith.addf %2, %4 : vector<8x128xf32>
    %cst_5 = arith.constant 0.000000e+00 : f32
    %6 = vector.broadcast %cst_5 : f32 to vector<8x128xf32>
    %7 = arith.maximumf %5, %6 : vector<8x128xf32>
    %c0_6 = arith.constant 0 : index
    %c0_7 = arith.constant 0 : index
    %8 = vector.load %arg4[%c0_6, %c0_7] : memref<128x128xf32, #tpu.memory_space<vmem>>, vector<128x128xf32>
    %cst_8 = arith.constant dense<0.000000e+00> : vector<8x128xf32>
    %9 = tpu.matmul %7, %8, %cst_8 {dimension_numbers = #tpu.dot_dimension_numbers<[1], [0], [0], [1], [0, 0, 1, 1], [], []>} : vector<8x128xf32>, vector<128x128xf32>, vector<8x128xf32> -> vector<8x128xf32>
    %c0_9 = arith.constant 0 : index
    %c0_10 = arith.constant 0 : index
    %10 = vector.load %arg5[%c0_9, %c0_10] : memref<1x128xf32, #tpu.memory_space<vmem>>, vector<1x128xf32>
    %11 = vector.broadcast %10 : vector<1x128xf32> to vector<8x128xf32>
    %12 = arith.addf %9, %11 : vector<8x128xf32>
    %cst_11 = arith.constant 0.000000e+00 : f32
    %13 = vector.broadcast %cst_11 : f32 to vector<8x128xf32>
    %14 = arith.maximumf %12, %13 : vector<8x128xf32>
    %c0_12 = arith.constant 0 : index
    %c0_13 = arith.constant 0 : index
    %15 = vector.load %arg6[%c0_12, %c0_13] : memref<128x128xf32, #tpu.memory_space<vmem>>, vector<128x128xf32>
    %cst_14 = arith.constant dense<0.000000e+00> : vector<8x128xf32>
    %16 = tpu.matmul %14, %15, %cst_14 {dimension_numbers = #tpu.dot_dimension_numbers<[1], [0], [0], [1], [0, 0, 1, 1], [], []>} : vector<8x128xf32>, vector<128x128xf32>, vector<8x128xf32> -> vector<8x128xf32>
    %c0_15 = arith.constant 0 : index
    %c0_16 = arith.constant 0 : index
    %17 = vector.load %arg7[%c0_15, %c0_16] : memref<1x128xf32, #tpu.memory_space<vmem>>, vector<1x128xf32>
    %18 = vector.broadcast %17 : vector<1x128xf32> to vector<8x128xf32>
    %19 = arith.addf %16, %18 : vector<8x128xf32>
    %cst_17 = arith.constant 0.000000e+00 : f32
    %20 = vector.broadcast %cst_17 : f32 to vector<8x128xf32>
    %21 = arith.maximumf %19, %20 : vector<8x128xf32>
    %c0_18 = arith.constant 0 : index
    %c0_19 = arith.constant 0 : index
    %22 = vector.load %arg8[%c0_18, %c0_19] : memref<128x32xf32, #tpu.memory_space<vmem>>, vector<128x32xf32>
    %cst_20 = arith.constant dense<0.000000e+00> : vector<8x32xf32>
    %23 = tpu.matmul %21, %22, %cst_20 {dimension_numbers = #tpu.dot_dimension_numbers<[1], [0], [0], [1], [0, 0, 1, 1], [], []>} : vector<8x128xf32>, vector<128x32xf32>, vector<8x32xf32> -> vector<8x32xf32>
    %c0_21 = arith.constant 0 : index
    %c0_22 = arith.constant 0 : index
    %24 = vector.load %arg9[%c0_21, %c0_22] : memref<1x32xf32, #tpu.memory_space<vmem>>, vector<1x32xf32>
    %25 = vector.broadcast %24 : vector<1x32xf32> to vector<8x32xf32>
    %26 = arith.addf %23, %25 : vector<8x32xf32>
    %cst_23 = arith.constant 0.000000e+00 : f32
    %27 = vector.broadcast %cst_23 : f32 to vector<8x32xf32>
    %28 = arith.maximumf %26, %27 : vector<8x32xf32>
    %c0_24 = arith.constant 0 : index
    %c0_25 = arith.constant 0 : index
    %29 = vector.load %arg10[%c0_24, %c0_25] : memref<8x32xf32, #tpu.memory_space<vmem>>, vector<8x32xf32>
    tpu.vector_store %arg10[%c0_24, %c0_25], %28 {strides = array<i32>} : memref<8x32xf32, #tpu.memory_space<vmem>>, vector<8x32xf32>,
    return
  }
  func.func @transform_0(%arg0: i32) -> (i32, i32) {
    %c0_i32 = arith.constant 0 : i32
    %c0_i32_0 = arith.constant 0 : i32
    return %arg0, %c0_i32 : i32, i32
  }
  func.func @transform_1(%arg0: i32) -> (i32, i32) {
    %c0_i32 = arith.constant 0 : i32
    %c0_i32_0 = arith.constant 0 : i32
    %c0_i32_1 = arith.constant 0 : i32
    return %c0_i32, %c0_i32_0 : i32, i32
  }
  func.func @transform_2(%arg0: i32) -> (i32, i32) {
    %c0_i32 = arith.constant 0 : i32
    %c0_i32_0 = arith.constant 0 : i32
    %c0_i32_1 = arith.constant 0 : i32
    return %c0_i32, %c0_i32_0 : i32, i32
  }
  func.func @transform_3(%arg0: i32) -> (i32, i32) {
    %c0_i32 = arith.constant 0 : i32
    %c0_i32_0 = arith.constant 0 : i32
    %c0_i32_1 = arith.constant 0 : i32
    return %c0_i32, %c0_i32_0 : i32, i32
  }
  func.func @transform_4(%arg0: i32) -> (i32, i32) {
    %c0_i32 = arith.constant 0 : i32
    %c0_i32_0 = arith.constant 0 : i32
    %c0_i32_1 = arith.constant 0 : i32
    return %c0_i32, %c0_i32_0 : i32, i32
  }
  func.func @transform_5(%arg0: i32) -> (i32, i32) {
    %c0_i32 = arith.constant 0 : i32
    %c0_i32_0 = arith.constant 0 : i32
    %c0_i32_1 = arith.constant 0 : i32
    return %c0_i32, %c0_i32_0 : i32, i32
  }
  func.func @transform_6(%arg0: i32) -> (i32, i32) {
    %c0_i32 = arith.constant 0 : i32
    %c0_i32_0 = arith.constant 0 : i32
    %c0_i32_1 = arith.constant 0 : i32
    return %c0_i32, %c0_i32_0 : i32, i32
  }
  func.func @transform_7(%arg0: i32) -> (i32, i32) {
    %c0_i32 = arith.constant 0 : i32
    %c0_i32_0 = arith.constant 0 : i32
    %c0_i32_1 = arith.constant 0 : i32
    return %c0_i32, %c0_i32_0 : i32, i32
  }
  func.func @transform_8(%arg0: i32) -> (i32, i32) {
    %c0_i32 = arith.constant 0 : i32
    %c0_i32_0 = arith.constant 0 : i32
    %c0_i32_1 = arith.constant 0 : i32
    return %c0_i32, %c0_i32_0 : i32, i32
  }
  func.func @transform_9(%arg0: i32) -> (i32, i32) {
    %c0_i32 = arith.constant 0 : i32
    %c0_i32_0 = arith.constant 0 : i32
    return %arg0, %c0_i32 : i32, i32
  }
}

</mosaic_0001>

<bundles_post_ra>
// kernel: tpu_custom_call.1
= control target key start
LH: loop header
LB: loop body
LE: loop exit
PB: predicated region body
PF: predicated region fallthrough
CT: control target
= control target key end

     0   :  { %14 = vsyncpa [#allocation3], 0  ;;  %s982_s0 = inlined_call_operand.vmem [shape: f32[8,32], index: 0, kind: input, shape index: {}]   ;;  %s983_s1 = inlined_call_operand.vmem [shape: f32[32,128], index: 1, kind: input, shape index: {}]   ;;  %s984_s2 = inlined_call_operand.vmem [shape: f32[1,128], index: 2, kind: input, shape index: {}]   ;;  %s985_s3 = inlined_call_operand.vmem [shape: f32[128,128], index: 3, kind: input, shape index: {}]   ;;  %s986_s4 = inlined_call_operand.vmem [shape: f32[1,128], index: 4, kind: input, shape index: {}]   ;;  %s987_s5 = inlined_call_operand.hbm [shape: f32[128,128], index: 5, kind: input, shape index: {}]   ;;  %s988_s6 = inlined_call_operand.vmem [shape: f32[1,128], index: 6, kind: input, shape index: {}]   ;;  %s989_s7 = inlined_call_operand.vmem [shape: f32[128,32], index: 7, kind: input, shape index: {}]   ;;  %s990_s8 = inlined_call_operand.vmem [shape: f32[1,32], index: 8, kind: input, shape index: {}]   ;;  %s991_s9 = inlined_call_operand.hbm [shape: f32[8,32], index: 9, kind: output, shape index: {}]  }
   0x1   :  { %15 = vsyncpa [#allocation4], 0  ;;  %s742_s30 = smov [#allocation2]   ;;  %s694_s13 = scalar_lea.hbm %s987_s5, 2048 }
   0x2   :  { %s31_s10 = sshll.u32 %s742_s30, 4  ;;  %p695_p0 = scmp.ne.s32.totalorder %s987_s5, %s694_s13  ;;  %s32_s10 = int_to_ptr.vmem [resolvable:$true] %s31_s10 }
   0x3   :  { %p698_p1 = scmp.lt.u32.totalorder %s694_s13, %s987_s5 }
   0x5   :  { %p700_p2 = pnand %p698_p1, %p695_p0 }
   0x7   :  { %703 = shalt.err (!%p700_p2)
}
   0x8   :  { %s704_s18 = scalar_lea.vmem %s32_s10, 2048  ;;  %p709_p4 = scmp.lt.s32.totalorder %s32_s10, %s32_s10 }
   0x9   :  { %p705_p3 = scmp.ne.s32.totalorder %s32_s10, %s704_s18  ;;  %p710_p5 = scmp.lt.s32.totalorder %s704_s18, %s704_s18 }
   0xb   :  { %p711_p6 = por %p710_p5, %p709_p4 }
   0xd   :  { %p712_p7 = pnand %p711_p6, %p705_p3 }
   0xf   :  { %715 = shalt.err (!%p712_p7)
}
  0x10   :  { %s743_s19 = smov 128   ;;  %s744_s20 = smov 8  }
  0x11   :  { %37 = dma.hbm_to_vmem [thread:$0]  %s987_s5, 2048, %s32_s10, [#allocation3], %s743_s19, %s743_s19, %s744_s20  }
  0x12   :  { %738 = dma.done.wait [#allocation3], 2048  }
  0x13   :  { %739 = vsyncadd [#allocation3], 4294965248  ;;  %v745_v0 = vmov 0.0|0.0   ;;  %vm746_vm0 = vmmov 0   ;;  %v747_v1 = vmov 0.0   ;;  %v48_v2 = vld [vmem:[%s983_s1] sm:$0xff] }
  0x14   :  { %609 = vmatprep.subr.bf16.mxu0 %v745_v0  ;;  %501 = vmatprep.mubr.msk.f32.mxu0 %vm746_vm0, %v747_v1  ;;  %v49_v3 = vld [vmem:[%s983_s1 + $0x8] sm:$0xff]  ;;  %v50_v4 = vld [vmem:[%s983_s1 + $0x10] sm:$0xff]  ;;  %v51_v6 = vld [vmem:[%s983_s1 + $0x18] sm:$0xff]  ;;  %vm59_vm1 = vcmask 261120   ;;  %s748_s27 = smov [#allocation5]  }
  0x15   :  { %615 = vmatprep.subr.bf16.mxu1 %v745_v0  ;;  %536 = vmatprep.mubr.msk.f32.mxu1 %vm746_vm0, %v747_v1  ;;  %v610_v5 = vpack.c.bf16 %v49_v3, %v48_v2  ;;  %v134_v7 = vld [vmem:[%s985_s3] sm:$0xff]  ;;  %v135_v8 = vld [vmem:[%s985_s3 + $0x8] sm:$0xff]  ;;  %v136_v9 = vld [vmem:[%s985_s3 + $0x10] sm:$0xff]  ;;  %v613_v11 = vpack.c.bf16 %v51_v6, %v50_v4  ;;  %s423_s28 = sshll.u32 %s748_s27, 4  ;;  %s424_s28 = int_to_ptr.vmem [resolvable:$true] %s423_s28 }
  0x16   :  { %v137_v10 = vld [vmem:[%s985_s3 + $0x18] sm:$0xff]  ;;  %v616_v12 = vpack.c.bf16 %v135_v8, %v134_v7  ;;  %v138_v14 = vld [vmem:[%s985_s3 + $0x20] sm:$0xff]  ;;  %v139_v15 = vld [vmem:[%s985_s3 + $0x28] sm:$0xff]  ;;  %p721_p9 = scmp.lt.s32.totalorder %s424_s28, %s424_s28 }
  0x17   :  { %611 = vmatpush3.bf16.msra.mxu0 %v610_v5  ;;  %v619_v13 = vpack.c.bf16 %v137_v10, %v136_v9  ;;  %v47_v16 = vld [vmem:[%s982_s0] sm:$0xff]  ;;  %v622_v17 = vpack.c.bf16 %v139_v15, %v138_v14  ;;  %v140_v18 = vld [vmem:[%s985_s3 + $0x30] sm:$0xff]  ;;  %v141_v19 = vld [vmem:[%s985_s3 + $0x38] sm:$0xff] }
  0x18   :  { %612 = vmatprep.subr.bf16.mxu0 %v745_v0  ;;  %617 = vmatpush3.bf16.msra.mxu1 %v616_v12  ;;  %v625_v20 = vpack.c.bf16 %v141_v19, %v140_v18  ;;  %v142_v21 = vld [vmem:[%s985_s3 + $0x40] sm:$0xff]  ;;  %v143_v22 = vld [vmem:[%s985_s3 + $0x48] sm:$0xff]  ;;  %v144_v24 = vld [vmem:[%s985_s3 + $0x50] sm:$0xff] }
  0x19   :  { %618 = vmatprep.subr.bf16.mxu1 %v745_v0  ;;  %v628_v23 = vpack.c.bf16 %v143_v22, %v142_v21  ;;  %v145_v25 = vld [vmem:[%s985_s3 + $0x58] sm:$0xff]  ;;  %v146_v27 = vld [vmem:[%s985_s3 + $0x60] sm:$0xff]  ;;  %v147_v28 = vld [vmem:[%s985_s3 + $0x68] sm:$0xff] }
  0x1a   :  { %v631_v26 = vpack.c.bf16 %v145_v25, %v144_v24  ;;  %v634_v29 = vpack.c.bf16 %v147_v28, %v146_v27  ;;  %v148_v30 = vld [vmem:[%s985_s3 + $0x70] sm:$0xff]  ;;  %v149_v31 = vld [vmem:[%s985_s3 + $0x78] sm:$0xff]  ;;  %v228_v33 = vld [vmem:[#allocation2] sm:$0xff] }
  0x1b   :  { %614 = vmatpush3.bf16.msra.mxu0 %v613_v11  ;;  %v637_v32 = vpack.c.bf16 %v149_v31, %v148_v30  ;;  %v229_v34 = vld [vmem:[#allocation2 + $0x8] sm:$0xff]  ;;  %v230_v35 = vld [vmem:[#allocation2 + $0x10] sm:$0xff]  ;;  %v231_v37 = vld [vmem:[#allocation2 + $0x18] sm:$0xff] }
  0x1c   :  { %639 = vmatprep.subr.bf16.mxu0 %v745_v0  ;;  %620 = vmatpush3.bf16.msra.mxu1 %v619_v13  ;;  %v640_v36 = vpack.c.bf16 %v229_v34, %v228_v33  ;;  %v643_v38 = vpack.c.bf16 %v231_v37, %v230_v35  ;;  %v232_v39 = vld [vmem:[#allocation2 + $0x20] sm:$0xff]  ;;  %v233_v40 = vld [vmem:[#allocation2 + $0x28] sm:$0xff]  ;;  %v234_v42 = vld [vmem:[#allocation2 + $0x30] sm:$0xff] }
  0x1d   :  { %621 = vmatprep.subr.bf16.mxu1 %v745_v0  ;;  %v646_v41 = vpack.c.bf16 %v233_v40, %v232_v39  ;;  %v235_v43 = vld [vmem:[#allocation2 + $0x38] sm:$0xff]  ;;  %v236_v45 = vld [vmem:[#allocation2 + $0x40] sm:$0xff]  ;;  %v237_v46 = vld [vmem:[#allocation2 + $0x48] sm:$0xff] }
  0x1e   :  { %502 = vmatmul.mubr.msk.f32.vlgmr.msra.gmra.mrb[0].mxu0 %vm59_vm1, %v47_v16  ;;  %v649_v44 = vpack.c.bf16 %v235_v43, %v234_v42  ;;  %v652_v47 = vpack.c.bf16 %v237_v46, %v236_v45  ;;  %v238_v48 = vld [vmem:[#allocation2 + $0x50] sm:$0xff]  ;;  %v239_v49 = vld [vmem:[#allocation2 + $0x58] sm:$0xff]  ;;  %v240_v51 = vld [vmem:[#allocation2 + $0x60] sm:$0xff] }
  0x1f   :  { %571 = vmatprep.mubr.msk.f32.mxu0 %vm746_vm0, %v747_v1  ;;  %641 = vmatpush3.bf16.msra.mxu0 %v640_v36  ;;  %v655_v50 = vpack.c.bf16 %v239_v49, %v238_v48  ;;  %v241_v52 = vld [vmem:[#allocation2 + $0x68] sm:$0xff]  ;;  %v432_v54 = vld [vmem:[%s984_s2] ss:$0 sm:$0xff]  ;;  %v242_v59 = vld [vmem:[#allocation2 + $0x70] sm:$0xff] }
  0x20   :  { %623 = vmatpush3.bf16.msra.mxu1 %v622_v17  ;;  %642 = vmatprep.subr.bf16.mxu0 %v745_v0  ;;  %v658_v53 = vpack.c.bf16 %v241_v52, %v240_v51  ;;  %v243_v60 = vld [vmem:[#allocation2 + $0x78] sm:$0xff]  ;;  %v322_v62 = vld [vmem:[%s989_s7] sm:$0xff]  ;;  %v323_v63 = vld [vmem:[%s989_s7 + $0x8] sm:$0xff] }
  0x21   :  { %624 = vmatprep.subr.bf16.mxu1 %v745_v0  ;;  %v661_v61 = vpack.c.bf16 %v243_v60, %v242_v59  ;;  %v324_v2 = vld [vmem:[%s989_s7 + $0x10] sm:$0xff]  ;;  %v664_v3 = vpack.c.bf16 %v323_v63, %v322_v62  ;;  %v326_v5 = vld [vmem:[%s989_s7 + $0x20] sm:$0xff]  ;;  %v327_v6 = vld [vmem:[%s989_s7 + $0x28] sm:$0xff] }
  0x22   :  { %v670_v7 = vpack.c.bf16 %v327_v6, %v326_v5  ;;  %v328_v8 = vld [vmem:[%s989_s7 + $0x30] sm:$0xff]  ;;  %v329_v9 = vld [vmem:[%s989_s7 + $0x38] sm:$0xff]  ;;  %v330_v11 = vld [vmem:[%s989_s7 + $0x40] sm:$0xff] }
  0x23   :  { %644 = vmatpush3.bf16.msra.mxu0 %v643_v38  ;;  %v673_v10 = vpack.c.bf16 %v329_v9, %v328_v8  ;;  %v331_v12 = vld [vmem:[%s989_s7 + $0x48] sm:$0xff]  ;;  %v332_v14 = vld [vmem:[%s989_s7 + $0x50] sm:$0xff]  ;;  %v333_v15 = vld [vmem:[%s989_s7 + $0x58] sm:$0xff] }
  0x24   :  { %626 = vmatpush3.bf16.msra.mxu1 %v625_v20  ;;  %645 = vmatprep.subr.bf16.mxu0 %v745_v0  ;;  %v676_v13 = vpack.c.bf16 %v331_v12, %v330_v11  ;;  %v679_v16 = vpack.c.bf16 %v333_v15, %v332_v14  ;;  %v334_v17 = vld [vmem:[%s989_s7 + $0x60] sm:$0xff]  ;;  %v335_v18 = vld [vmem:[%s989_s7 + $0x68] sm:$0xff]  ;;  %v336_v25 = vld [vmem:[%s989_s7 + $0x70] sm:$0xff] }
  0x25   :  { %627 = vmatprep.subr.bf16.mxu1 %v745_v0  ;;  %v682_v19 = vpack.c.bf16 %v335_v18, %v334_v17  ;;  %v434_v20 = vld [vmem:[%s986_s4] ss:$0 sm:$0xff] }
  0x27   :  { %647 = vmatpush3.bf16.msra.mxu0 %v646_v41 }
  0x28   :  { %629 = vmatpush3.bf16.msra.mxu1 %v628_v23  ;;  %648 = vmatprep.subr.bf16.mxu0 %v745_v0 }
  0x29   :  { %630 = vmatprep.subr.bf16.mxu1 %v745_v0 }
  0x2b   :  { %650 = vmatpush3.bf16.msra.mxu0 %v649_v44 }
  0x2c   :  { %632 = vmatpush3.bf16.msra.mxu1 %v631_v26  ;;  %651 = vmatprep.subr.bf16.mxu0 %v745_v0  ;;  %v337_v26 = vld [vmem:[%s989_s7 + $0x78] sm:$0xff] }
  0x2d   :  { %633 = vmatprep.subr.bf16.mxu1 %v745_v0  ;;  %v685_v27 = vpack.c.bf16 %v337_v26, %v336_v25 }
  0x2f   :  { %653 = vmatpush3.bf16.msra.mxu0 %v652_v47 }
  0x30   :  { %635 = vmatpush3.bf16.msra.mxu1 %v634_v29  ;;  %654 = vmatprep.subr.bf16.mxu0 %v745_v0 }
  0x31   :  { %636 = vmatprep.subr.bf16.mxu1 %v745_v0 }
  0x33   :  { %656 = vmatpush3.bf16.msra.mxu0 %v655_v50 }
  0x34   :  { %638 = vmatpush3.bf16.msra.mxu1 %v637_v32  ;;  %657 = vmatprep.subr.bf16.mxu0 %v745_v0  ;;  %v436_v32 = vld [vmem:[%s990_s8] ss:$0 sm:$0xff] }
  0x35   :  { %663 = vmatprep.subr.bf16.mxu1 %v745_v0 }
  0x37   :  { %659 = vmatpush3.bf16.msra.mxu0 %v658_v53 }
  0x38   :  { %660 = vmatprep.subr.bf16.mxu0 %v745_v0 }
  0x3b   :  { %662 = vmatpush3.bf16.msra.mxu0 %v661_v61 }
  0xf1   :  { %v129_v55 = vpop.f32.mrb[0].mxu0 }
  0xf2   :  { %v130_v56 = vadd.f32 %v432_v54, %v129_v55  ;;  %v503_v57 = vpop.f32.mrb[1].mxu0 }
  0xf4   :  { %v133_v58 = vmax.f32 %v130_v56, 0.0 }
  0xf6   :  { %537 = vmatmul.mubr.f32.vlgmr.msra.gmra.mrb[0].mxu1 %v133_v58 }
  0xf7   :  { %606 = vmatprep.mubr.msk.f32.mxu1 %vm746_vm0, %v747_v1  ;;  %v325_v1 = vld [vmem:[%s989_s7 + $0x18] sm:$0xff]  ;;  %665 = vmatpush3.bf16.msra.mxu1 %v664_v3  ;;  %s716_s7 = scalar_lea.vmem %s424_s28, 128 }
  0xf8   :  { %v667_v4 = vpack.c.bf16 %v325_v1, %v324_v2  ;;  %666 = vmatprep.subr.bf16.mxu1 %v745_v0  ;;  %p717_p8 = scmp.ne.s32.totalorder %s424_s28, %s716_s7  ;;  %p722_p10 = scmp.lt.s32.totalorder %s716_s7, %s716_s7 }
  0xfa   :  { %p723_p11 = por %p722_p10, %p721_p9 }
  0xfb   :  { %668 = vmatpush3.bf16.msra.mxu1 %v667_v4 }
  0xfc   :  { %669 = vmatprep.subr.bf16.mxu1 %v745_v0  ;;  %p724_p12 = pnand %p723_p11, %p717_p8 }
  0xff   :  { %671 = vmatpush3.bf16.msra.mxu1 %v670_v7 }
 0x100   :  { %672 = vmatprep.subr.bf16.mxu1 %v745_v0 }
 0x103   :  { %674 = vmatpush3.bf16.msra.mxu1 %v673_v10 }
 0x104   :  { %675 = vmatprep.subr.bf16.mxu1 %v745_v0 }
 0x107   :  { %677 = vmatpush3.bf16.msra.mxu1 %v676_v13 }
 0x108   :  { %678 = vmatprep.subr.bf16.mxu1 %v745_v0 }
 0x10b   :  { %680 = vmatpush3.bf16.msra.mxu1 %v679_v16 }
 0x10c   :  { %681 = vmatprep.subr.bf16.mxu1 %v745_v0 }
 0x10f   :  { %683 = vmatpush3.bf16.msra.mxu1 %v682_v19 }
 0x110   :  { %684 = vmatprep.subr.bf16.mxu1 %v745_v0  ;;  %v435_v0 = vld [vmem:[%s988_s6] ss:$0 sm:$0xff] }
 0x113   :  { %686 = vmatpush3.bf16.msra.mxu1 %v685_v27 }
 0x1c9   :  { %v223_v21 = vpop.f32.mrb[0].mxu1 }
 0x1ca   :  { %v224_v22 = vadd.f32 %v434_v20, %v223_v21  ;;  %v538_v23 = vpop.f32.mrb[1].mxu1 }
 0x1cc   :  { %v227_v24 = vmax.f32 %v224_v22, 0.0 }
 0x1ce   :  { %572 = vmatmul.mubr.f32.vlgmr.msra.gmra.mrb[2].mxu0 %v227_v24 }
 0x2a1   :  { %v317_v28 = vpop.f32.mrb[2].mxu0 }
 0x2a2   :  { %v318_v29 = vadd.f32 %v435_v0, %v317_v28  ;;  %v573_v30 = vpop.f32.mrb[3].mxu0 }
 0x2a4   :  { %v321_v31 = vmax.f32 %v318_v29, 0.0 }
 0x2a6   :  { %607 = vmatmul.mubr.f32.vlgmr.msra.gmra.mrb[2].mxu1 %v321_v31 }
 0x379   :  { %v411_v33 = vpop.f32.mrb[2].mxu1 }
 0x37a   :  { %v412_v34 = vadd.f32 %v436_v32, %v411_v33  ;;  %v608_v35 = vpop.f32.mrb[3].mxu1 }
 0x37c   :  { %v415_v36 = vmax.f32 %v412_v34, 0.0 }
 0x37e   :  { %416 = vst.msk [vmem:[#allocation5] sm:$0xff] %vm59_vm1, %v415_v36 }
 0x37f   :  { %727 = shalt.err (!%p724_p12)
}
 0x380   :  { %s728_s8 = scalar_lea.hbm %s991_s9, 128 }
 0x381   :  { %p729_p13 = scmp.ne.s32.totalorder %s991_s9, %s728_s8  ;;  %p732_p0 = scmp.lt.u32.totalorder %s728_s8, %s991_s9 }
 0x383   :  { %p734_p1 = pnand %p732_p0, %p729_p13 }
 0x385   :  { %737 = shalt.err (!%p734_p1)
}
 0x386   :  { %426 = dma.vmem_to_hbm [thread:$0]  %s424_s28, 128, %s991_s9, [#allocation4]  }
 0x387   :  { %740 = dma.done.wait [#allocation4], 128  }
 0x388   :  { %741 = vsyncadd [#allocation4], 4294967168 }
 0x389   :  { %430 = vsyncpa [#allocation3], 1 }
 0x38a   :  { %431 = vsyncpa [#allocation4], 1 }

</bundles_post_ra>
